<compile_context>
chip_gen: v5e
topology: v5e:2x2
jax: 0.10.0
libtpu: 0.0.40
codegen_flags: <defaults>
</compile_context>

<pallas_src>
import jax
import jax.numpy as jnp
from jax.experimental import pallas as pl
from jax.experimental.pallas import tpu as pltpu

IN_FEATURES = 42
HIDDEN = 128
OUT_FEATURES = 7


def _round_up(n, m):
    return ((n + m - 1) // m) * m


def qnetwork_kernel(x_ref, w1_ref, b1_ref, w2_ref, b2_ref, out_ref):
    # fc1: (tb, 42) @ (42, 128) + (1, 128), ReLU   (MXU matmul, VPU bias/relu)
    h = jnp.dot(x_ref[...], w1_ref[...], preferred_element_type=jnp.float32)
    h = jnp.maximum(h + b1_ref[...], 0.0)
    # fc2: (tb, 128) @ (128, 7) + (1, 7)  -- N=7 costs the same MXU passes as
    # N=128, and the 7-lane store keeps HBM writeback at its true width.
    o = jnp.dot(h, w2_ref[...], preferred_element_type=jnp.float32)
    out_ref[...] = (o + b2_ref[...]).astype(out_ref.dtype)


def _choose_batch_tile(B, block_b):
    tb = min(block_b, _round_up(B, 8))
    # Guarantee >= 2 independent grid steps when the batch is worth splitting,
    # so the "parallel" grid axis can be sharded across v7x's two TensorCores.
    if B > 16 and pl.cdiv(B, tb) < 2:
        tb = _round_up(pl.cdiv(B, 2), 8)
    return tb


def qnetwork_forward(x, w1, b1, w2, b2, *, block_b=2048):
    """x: (B, 42) f32 -> (B, 7) f32.

    Weights stored transposed relative to PyTorch: w1 (42,128), w2 (128,7),
    biases as (1, out).
    """
    B, K = x.shape
    assert K == IN_FEATURES, K

    tb = _choose_batch_tile(B, block_b)
    grid = (pl.cdiv(B, tb),)  # partial last block handled by Pallas masking

    out = pl.pallas_call(
        qnetwork_kernel,
        out_shape=jax.ShapeDtypeStruct((B, OUT_FEATURES), jnp.float32),
        grid=grid,
        in_specs=[
            # x streams through in (tb, 42) tiles.
            pl.BlockSpec((tb, IN_FEATURES), lambda i: (i, 0)),
            # Parameters: constant index maps -> fetched once, VMEM-resident.
            pl.BlockSpec((IN_FEATURES, HIDDEN), lambda i: (0, 0)),
            pl.BlockSpec((1, HIDDEN), lambda i: (0, 0)),
            pl.BlockSpec((HIDDEN, OUT_FEATURES), lambda i: (0, 0)),
            pl.BlockSpec((1, OUT_FEATURES), lambda i: (0, 0)),
        ],
        out_specs=pl.BlockSpec((tb, OUT_FEATURES), lambda i: (i, 0)),
        compiler_params=pltpu.CompilerParams(
            # Independent batch tiles: lets v7x shard them across its 2 TCs.
            dimension_semantics=("parallel",),
        ),
    )(x, w1, b1, w2, b2)

    return out


def init_params(key):
    """Deterministic init mimicking nn.Linear's uniform(-1/sqrt(fan_in))."""
    k1, k2, k3, k4 = jax.random.split(key, 4)
    bound1 = 1.0 / jnp.sqrt(IN_FEATURES)
    bound2 = 1.0 / jnp.sqrt(HIDDEN)
    # Stored as (in_features, out_features) — transpose of PyTorch's (out, in).
    w1 = jax.random.uniform(k1, (IN_FEATURES, HIDDEN), jnp.float32, -bound1, bound1)
    b1 = jax.random.uniform(k2, (1, HIDDEN), jnp.float32, -bound1, bound1)
    w2 = jax.random.uniform(k3, (HIDDEN, OUT_FEATURES), jnp.float32, -bound2, bound2)
    b2 = jax.random.uniform(k4, (1, OUT_FEATURES), jnp.float32, -bound2, bound2)
    return w1, b1, w2, b2


def reference_forward(x, w1, b1, w2, b2):
    h = jnp.maximum(x @ w1 + b1, 0.0)
    return h @ w2 + b2


if __name__ == "__main__":
    key = jax.random.PRNGKey(0)
    kx, kp = jax.random.split(key)

    # Small case: Connect-4 board flattened to 42 features, batch of 4.
    B = 4
    x = jax.random.normal(kx, (B, IN_FEATURES), dtype=jnp.float32)
    w1, b1, w2, b2 = init_params(kp)

    out = jax.block_until_ready(qnetwork_forward(x, w1, b1, w2, b2))
    ref = reference_forward(x, w1, b1, w2, b2)
    assert out.shape == (B, OUT_FEATURES), out.shape
    assert jnp.allclose(out, ref, atol=1e-5, rtol=1e-5), "mismatch vs reference"

    # Larger batch: exercises the multi-step grid and the partial last block.
    B2 = 1100
    x2 = jax.random.normal(kx, (B2, IN_FEATURES), dtype=jnp.float32)
    out2 = jax.block_until_ready(qnetwork_forward(x2, w1, b1, w2, b2))
    ref2 = reference_forward(x2, w1, b1, w2, b2)
    assert out2.shape == (B2, OUT_FEATURES), out2.shape
    assert jnp.allclose(out2, ref2, atol=1e-4, rtol=1e-4), "mismatch vs reference (tiled)"

    print("KERNEL_OK")
</pallas_src>

<mosaic_0001>
module attributes {stable_mosaic.version = 11 : i64} {
  func.func @qnetwork_kernel(%arg0: i32, %arg1: memref<8x42xf32, #tpu.memory_space<vmem>>, %arg2: memref<42x128xf32, #tpu.memory_space<vmem>>, %arg3: memref<1x128xf32, #tpu.memory_space<vmem>>, %arg4: memref<128x7xf32, #tpu.memory_space<vmem>>, %arg5: memref<1x7xf32, #tpu.memory_space<vmem>>, %arg6: memref<8x7xf32, #tpu.memory_space<vmem>>) attributes {dimension_semantics = [#tpu.dimension_semantics<parallel>], iteration_bounds = array<i64: 1>, scalar_prefetch = 0 : i64, scratch_operands = 0 : i64, tpu.core_type = #tpu.core_type<tc>, window_params = [{transform_indices = @transform_0, window_bounds = array<i64: 8, 42>}, {pipeline_mode = #tpu.pipeline_mode<synchronous>, transform_indices = @transform_1, window_bounds = array<i64: 42, 128>}, {pipeline_mode = #tpu.pipeline_mode<synchronous>, transform_indices = @transform_2, window_bounds = array<i64: 1, 128>}, {pipeline_mode = #tpu.pipeline_mode<synchronous>, transform_indices = @transform_3, window_bounds = array<i64: 128, 7>}, {pipeline_mode = #tpu.pipeline_mode<synchronous>, transform_indices = @transform_4, window_bounds = array<i64: 1, 7>}, {transform_indices = @transform_5, window_bounds = array<i64: 8, 7>}]} {
    %c0 = arith.constant 0 : index
    %c0_0 = arith.constant 0 : index
    %0 = vector.load %arg1[%c0, %c0_0] : memref<8x42xf32, #tpu.memory_space<vmem>>, vector<8x42xf32>
    %c0_1 = arith.constant 0 : index
    %c0_2 = arith.constant 0 : index
    %1 = vector.load %arg2[%c0_1, %c0_2] : memref<42x128xf32, #tpu.memory_space<vmem>>, vector<42x128xf32>
    %cst = arith.constant dense<0.000000e+00> : vector<8x128xf32>
    %2 = tpu.matmul %0, %1, %cst {dimension_numbers = #tpu.dot_dimension_numbers<[1], [0], [0], [1], [0, 0, 1, 1], [], []>} : vector<8x42xf32>, vector<42x128xf32>, vector<8x128xf32> -> vector<8x128xf32>
    %c0_3 = arith.constant 0 : index
    %c0_4 = arith.constant 0 : index
    %3 = vector.load %arg3[%c0_3, %c0_4] : memref<1x128xf32, #tpu.memory_space<vmem>>, vector<1x128xf32>
    %4 = vector.broadcast %3 : vector<1x128xf32> to vector<8x128xf32>
    %5 = arith.addf %2, %4 : vector<8x128xf32>
    %cst_5 = arith.constant 0.000000e+00 : f32
    %6 = vector.broadcast %cst_5 : f32 to vector<8x128xf32>
    %7 = arith.maximumf %5, %6 : vector<8x128xf32>
    %c0_6 = arith.constant 0 : index
    %c0_7 = arith.constant 0 : index
    %8 = vector.load %arg4[%c0_6, %c0_7] : memref<128x7xf32, #tpu.memory_space<vmem>>, vector<128x7xf32>
    %cst_8 = arith.constant dense<0.000000e+00> : vector<8x7xf32>
    %9 = tpu.matmul %7, %8, %cst_8 {dimension_numbers = #tpu.dot_dimension_numbers<[1], [0], [0], [1], [0, 0, 1, 1], [], []>} : vector<8x128xf32>, vector<128x7xf32>, vector<8x7xf32> -> vector<8x7xf32>
    %c0_9 = arith.constant 0 : index
    %c0_10 = arith.constant 0 : index
    %10 = vector.load %arg5[%c0_9, %c0_10] : memref<1x7xf32, #tpu.memory_space<vmem>>, vector<1x7xf32>
    %11 = vector.broadcast %10 : vector<1x7xf32> to vector<8x7xf32>
    %12 = arith.addf %9, %11 : vector<8x7xf32>
    %c0_11 = arith.constant 0 : index
    %c0_12 = arith.constant 0 : index
    %13 = vector.load %arg6[%c0_11, %c0_12] : memref<8x7xf32, #tpu.memory_space<vmem>>, vector<8x7xf32>
    tpu.vector_store %arg6[%c0_11, %c0_12], %12 {strides = array<i32>} : memref<8x7xf32, #tpu.memory_space<vmem>>, vector<8x7xf32>,
    return
  }
  func.func @transform_0(%arg0: i32) -> (i32, i32) {
    %c0_i32 = arith.constant 0 : i32
    %c0_i32_0 = arith.constant 0 : i32
    return %arg0, %c0_i32 : i32, i32
  }
  func.func @transform_1(%arg0: i32) -> (i32, i32) {
    %c0_i32 = arith.constant 0 : i32
    %c0_i32_0 = arith.constant 0 : i32
    %c0_i32_1 = arith.constant 0 : i32
    return %c0_i32, %c0_i32_0 : i32, i32
  }
  func.func @transform_2(%arg0: i32) -> (i32, i32) {
    %c0_i32 = arith.constant 0 : i32
    %c0_i32_0 = arith.constant 0 : i32
    %c0_i32_1 = arith.constant 0 : i32
    return %c0_i32, %c0_i32_0 : i32, i32
  }
  func.func @transform_3(%arg0: i32) -> (i32, i32) {
    %c0_i32 = arith.constant 0 : i32
    %c0_i32_0 = arith.constant 0 : i32
    %c0_i32_1 = arith.constant 0 : i32
    return %c0_i32, %c0_i32_0 : i32, i32
  }
  func.func @transform_4(%arg0: i32) -> (i32, i32) {
    %c0_i32 = arith.constant 0 : i32
    %c0_i32_0 = arith.constant 0 : i32
    %c0_i32_1 = arith.constant 0 : i32
    return %c0_i32, %c0_i32_0 : i32, i32
  }
  func.func @transform_5(%arg0: i32) -> (i32, i32) {
    %c0_i32 = arith.constant 0 : i32
    %c0_i32_0 = arith.constant 0 : i32
    return %arg0, %c0_i32 : i32, i32
  }
}

</mosaic_0001>

<bundles_post_ra>
// kernel: tpu_custom_call.1
= control target key start
LH: loop header
LB: loop body
LE: loop exit
PB: predicated region body
PF: predicated region fallthrough
CT: control target
= control target key end

     0   :  { %10 = vsyncpa [#allocation3], 0  ;;  %vm36_vm0 = vcmask 1041408   ;;  %vm32_vm1 = vcmask 343040   ;;  %vm101_vm2 = vcmask 56320   ;;  %s265_s0 = inlined_call_operand.vmem [shape: f32[4,42], index: 0, kind: input, shape index: {}]   ;;  %s266_s1 = inlined_call_operand.vmem [shape: f32[42,128], index: 1, kind: input, shape index: {}]   ;;  %s267_s2 = inlined_call_operand.vmem [shape: f32[1,128], index: 2, kind: input, shape index: {}]   ;;  %s268_s3 = inlined_call_operand.vmem [shape: f32[128,7], index: 3, kind: input, shape index: {}]   ;;  %s269_s4 = inlined_call_operand.vmem [shape: f32[1,7], index: 4, kind: input, shape index: {}]   ;;  %s270_s5 = inlined_call_operand.hbm [shape: f32[4,7], index: 5, kind: output, shape index: {}]  }
   0x1   :  { %v27_v0 = vld [vmem:[%s266_s1 + $0x28] sm:$0x3]  ;;  %v26_v1 = vld [vmem:[%s266_s1 + $0x20] sm:$0xff]  ;;  %v25_v2 = vld [vmem:[%s266_s1 + $0x18] sm:$0xff] }
   0x2   :  { %121 = vmatpush.msk.msra.mxu0 %vm36_vm0, %v27_v0  ;;  %v76_v3 = vld [vmem:[%s268_s3 + $0x78] sm:$0xff]  ;;  %v75_v4 = vld [vmem:[%s268_s3 + $0x70] sm:$0xff]  ;;  %v74_v6 = vld [vmem:[%s268_s3 + $0x68] sm:$0xff] }
   0x3   :  { %81 = vmatpush.msra.mxu1 %v76_v3  ;;  %v24_v5 = vld [vmem:[%s266_s1 + $0x10] sm:$0xff]  ;;  %v23_v7 = vld [vmem:[%s266_s1 + $0x8] sm:$0xff]  ;;  %v73_v8 = vld [vmem:[%s268_s3 + $0x60] sm:$0xff] }
   0x4   :  { %51 = vmatpush.msra.mxu0 %v26_v1  ;;  %v22_v9 = vld [vmem:[%s266_s1] sm:$0xff]  ;;  %v72_v10 = vld [vmem:[%s268_s3 + $0x58] sm:$0xff]  ;;  %v71_v12 = vld [vmem:[%s268_s3 + $0x50] sm:$0xff] }
   0x5   :  { %82 = vmatpush.msra.mxu1 %v75_v4  ;;  %v21_v11 = vld [vmem:[%s265_s0] sm:$0xff]  ;;  %v70_v13 = vld [vmem:[%s268_s3 + $0x48] sm:$0xff]  ;;  %v68_v15 = vld [vmem:[%s268_s3 + $0x38] sm:$0xff] }
   0x6   :  { %52 = vmatpush.msra.mxu0 %v25_v2  ;;  %v69_v14 = vld [vmem:[%s268_s3 + $0x40] sm:$0xff]  ;;  %v67_v16 = vld [vmem:[%s268_s3 + $0x30] sm:$0xff]  ;;  %v66_v17 = vld [vmem:[%s268_s3 + $0x28] sm:$0xff] }
   0x7   :  { %83 = vmatpush.msra.mxu1 %v74_v6  ;;  %v65_v18 = vld [vmem:[%s268_s3 + $0x20] sm:$0xff]  ;;  %v64_v19 = vld [vmem:[%s268_s3 + $0x18] sm:$0xff]  ;;  %v63_v20 = vld [vmem:[%s268_s3 + $0x10] sm:$0xff] }
   0x8   :  { %53 = vmatpush.msra.mxu0 %v24_v5  ;;  %v62_v21 = vld [vmem:[%s268_s3 + $0x8] sm:$0xff]  ;;  %v61_v22 = vld [vmem:[%s268_s3] sm:$0xff] }
   0x9   :  { %84 = vmatpush.msra.mxu1 %v73_v8  ;;  %v126_v23 = vld [vmem:[%s267_s2] ss:$0 sm:$0xff] }
   0xa   :  { %54 = vmatpush.msra.mxu0 %v23_v7  ;;  %v127_v27 = vld [vmem:[%s269_s4] ss:$0 sm:$0xff] }
   0xb   :  { %85 = vmatpush.msra.mxu1 %v72_v10 }
   0xc   :  { %55 = vmatpush.msra.mxu0 %v22_v9 }
   0xd   :  { %122 = vmatmul.msk.f32.vlgmr.msra.gmra.mxu0 %vm32_vm1, %v21_v11  ;;  %86 = vmatpush.msra.mxu1 %v71_v12 }
   0xf   :  { %87 = vmatpush.msra.mxu1 %v70_v13 }
  0x11   :  { %88 = vmatpush.msra.mxu1 %v69_v14 }
  0x13   :  { %89 = vmatpush.msra.mxu1 %v68_v15 }
  0x15   :  { %90 = vmatpush.msra.mxu1 %v67_v16 }
  0x17   :  { %91 = vmatpush.msra.mxu1 %v66_v17 }
  0x19   :  { %92 = vmatpush.msra.mxu1 %v65_v18 }
  0x1b   :  { %93 = vmatpush.msra.mxu1 %v64_v19 }
  0x1d   :  { %94 = vmatpush.msra.mxu1 %v63_v20 }
  0x1f   :  { %95 = vmatpush.msra.mxu1 %v62_v21 }
  0x21   :  { %96 = vmatpush.msra.mxu1 %v61_v22 }
  0x8a   :  { %v57_v24 = vpop.f32.mrf.mxu0 }
  0x8b   :  { %v58_v25 = vadd.f32 %v126_v23, %v57_v24 }
  0x8d   :  { %v60_v26 = vmax.f32 %v58_v25, 0.0 }
  0x8f   :  { %97 = vmatmul.f32.vlgmr.msra.gmra.mxu1 %v60_v26 }
 0x10c   :  { %v98_v28 = vpop.f32.mrf.mxu1 }
 0x10d   :  { %v99_v29 = vadd.f32 %v127_v27, %v98_v28 }
 0x10f   :  { %102 = vst.msk [vmem:[#allocation2] sm:$0xff] %vm101_vm2, %v99_v29 }
 0x110   :  { %106 = vsyncadd [#allocation3], 64  ;;  %s109_s17 = sshll.u32 %s270_s5, 4  ;;  %s154_s18 = smov [#allocation2]   ;;  %s110_s17 = int_to_ptr.hbm [resolvable:$true] %s109_s17 }
 0x111   :  { %s107_s19 = sshll.u32 %s154_s18, 4  ;;  %s155_s2 = smov 64   ;;  %s108_s19 = int_to_ptr.vmem [resolvable:$true] %s107_s19 }
 0x112   :  { %s156_s1 = smov 4  }
 0x113   :  { %115 = dma.vmem_to_hbm [thread:$0]  %s108_s19, 64, %s110_s17, [#allocation3], %s155_s2, %s155_s2, %s156_s1  }
 0x114   :  { %152 = dma.done.wait [#allocation3], 128  }
 0x115   :  { %153 = vsyncadd [#allocation3], 4294967168 }
 0x116   :  { %120 = vsyncpa [#allocation3], 1 }

</bundles_post_ra>
